<compile_context>
chip_gen: v7x
topology: tpu7x:2x2x1
jax: 0.10.0
libtpu: 0.0.40
codegen_flags: <defaults>
</compile_context>

<pallas_src>
import jax
import jax.numpy as jnp
from jax.experimental import pallas as pl
from jax.experimental.pallas import tpu as pltpu

LANE = 128
SUBLANE_BF16 = 16            # bf16 packs 16 rows per vreg sublane group
PER_TC_VMEM = 64 * 1024 * 1024   # budget against the smallest part (v7x: 64 MiB/TC)


def _round_up(n, m):
    return ((n + m - 1) // m) * m


def dnn_kernel(x_ref, w1_ref, b1_ref, w2_ref, b2_ref, w3_ref, b3_ref, o_ref):
    # fc1 + ReLU  (dropout = identity in eval mode)
    h1 = jnp.dot(x_ref[...], w1_ref[...],
                 preferred_element_type=jnp.float32) + b1_ref[...]
    h1 = jnp.maximum(h1, 0.0)

    # fc2 + ReLU  (dropout = identity in eval mode)
    h2 = jnp.dot(h1.astype(jnp.bfloat16), w2_ref[...],
                 preferred_element_type=jnp.float32) + b2_ref[...]
    h2 = jnp.maximum(h2, 0.0)

    # fc3 (padded lanes carry a -1e30 bias baked in by the wrapper, so their
    # exp underflows to exactly 0 -> no in-kernel masking needed).
    logits = jnp.dot(h2.astype(jnp.bfloat16), w3_ref[...],
                     preferred_element_type=jnp.float32) + b3_ref[...]

    # Numerically stable softmax over the feature (lane) axis, all in f32.
    m = jnp.max(logits, axis=1, keepdims=True)
    e = jnp.exp(logits - m)
    denom = jnp.sum(e, axis=1, keepdims=True)
    o_ref[...] = (e / denom).astype(o_ref.dtype)


def dnn_forward(x, params, *, tile_b=512):
    """x: [B, input_size] f32.  params: dict of transposed f32 weights + biases.

    Returns f32 probabilities of shape [B, output_size]."""
    w1, b1, w2, b2, w3, b3 = (
        params["w1"], params["b1"], params["w2"],
        params["b2"], params["w3"], params["b3"],
    )
    B, in_size = x.shape
    hidden = w1.shape[1]
    out_size = w3.shape[1]

    # Pad hidden / output dims to full 128-lane width.  Padded channels stay
    # zero through the matmuls and ReLUs; padded fc3 biases are set to -1e30
    # so the padded logits vanish under the softmax.
    Hp = _round_up(hidden, LANE)
    Op = _round_up(out_size, LANE)

    w1p = jnp.pad(w1, ((0, 0), (0, Hp - hidden))).astype(jnp.bfloat16)
    b1p = jnp.pad(b1, ((0, 0), (0, Hp - hidden)))
    w2p = jnp.pad(w2, ((0, Hp - hidden), (0, Hp - hidden))).astype(jnp.bfloat16)
    b2p = jnp.pad(b2, ((0, 0), (0, Hp - hidden)))
    w3p = jnp.pad(w3, ((0, Hp - hidden), (0, Op - out_size))).astype(jnp.bfloat16)
    b3p = jnp.pad(b3, ((0, 0), (0, Op - out_size)), constant_values=-1e30)

    # Batch tiling: bf16 streaming requires a multiple of 16 rows per tile.
    tile_b = max(SUBLANE_BF16, min(int(tile_b), _round_up(B, SUBLANE_BF16)))
    tile_b = _round_up(tile_b, SUBLANE_BF16)
    # Keep at least 2 grid steps when the batch allows it (v7x has 2 TCs).
    if _round_up(B, tile_b) // tile_b < 2 and B > SUBLANE_BF16:
        tile_b = _round_up((B + 1) // 2, SUBLANE_BF16)
    Bp = _round_up(B, tile_b)
    grid = (Bp // tile_b,)

    # Stream activations in bf16 (halves x DMA bytes and the x double buffer).
    xp = jnp.pad(x, ((0, Bp - B), (0, 0))).astype(jnp.bfloat16)

    # VMEM budget (per TC).  Constant-index weight/bias blocks may still be
    # double-buffered by the pipeliner, so count them at 2x.
    weight_bytes = (w1p.size + w2p.size + w3p.size) * 2        # bf16, single copy
    bias_bytes = (b1p.size + b2p.size + b3p.size) * 4          # f32, single copy
    resident_bytes = 2 * (weight_bytes + bias_bytes)
    io_bytes = 2 * (tile_b * in_size * 2 + tile_b * Op * 2)    # double-buffered bf16 tiles
    act_bytes = 2 * tile_b * Hp * 4                            # f32 h1/h2 temporaries
    need = resident_bytes + io_bytes + act_bytes

    if resident_bytes > PER_TC_VMEM // 2:
        # TODO(synk): fall back to a K-tiled grid that streams w2/w3 instead
        # of keeping all weights resident.
        raise NotImplementedError(
            "hidden_size too large for the all-weights-resident design "
            f"(resident ~{resident_bytes >> 20} MiB > {PER_TC_VMEM >> 21} MiB)")

    vmem_limit = int(min(max(1.25 * need, 16 * 1024 * 1024), 0.6 * PER_TC_VMEM))

    flops = 2 * Bp * (in_size * Hp + Hp * Hp + Hp * Op)
    transcendentals = Bp * Op                                  # exp per (padded) logit
    bytes_accessed = xp.size * 2 + weight_bytes + bias_bytes + Bp * Op * 2

    out = pl.pallas_call(
        dnn_kernel,
        out_shape=jax.ShapeDtypeStruct((Bp, Op), jnp.bfloat16),
        grid=grid,
        in_specs=[
            pl.BlockSpec((tile_b, in_size), lambda i: (i, 0)),   # x tile (streamed, bf16)
            pl.BlockSpec((in_size, Hp), lambda i: (0, 0)),       # w1 (resident)
            pl.BlockSpec((1, Hp), lambda i: (0, 0)),             # b1
            pl.BlockSpec((Hp, Hp), lambda i: (0, 0)),            # w2
            pl.BlockSpec((1, Hp), lambda i: (0, 0)),             # b2
            pl.BlockSpec((Hp, Op), lambda i: (0, 0)),            # w3
            pl.BlockSpec((1, Op), lambda i: (0, 0)),             # b3 (pad cols = -1e30)
        ],
        out_specs=pl.BlockSpec((tile_b, Op), lambda i: (i, 0)),  # bf16 writeback
        compiler_params=pltpu.CompilerParams(
            dimension_semantics=("parallel",),
            vmem_limit_bytes=vmem_limit,
        ),
        cost_estimate=pl.CostEstimate(
            flops=flops,
            transcendentals=transcendentals,
            bytes_accessed=bytes_accessed,
        ),
    )(xp, w1p, b1p, w2p, b2p, w3p, b3p)

    # Slice away batch/lane padding and restore module-level f32 output.
    return out[:B, :out_size].astype(jnp.float32)


def init_params(key, input_size, hidden_size, output_size):
    """Deterministic init mimicking nn.Linear's U(-1/sqrt(fan_in), 1/sqrt(fan_in)).
    Weights are stored already transposed: [in, out]."""
    ks = jax.random.split(key, 6)

    def linear(kw, kb, fan_in, fan_out):
        bound = 1.0 / jnp.sqrt(fan_in)
        w = jax.random.uniform(kw, (fan_in, fan_out), jnp.float32, -bound, bound)
        b = jax.random.uniform(kb, (1, fan_out), jnp.float32, -bound, bound)
        return w, b

    w1, b1 = linear(ks[0], ks[1], input_size, hidden_size)
    w2, b2 = linear(ks[2], ks[3], hidden_size, hidden_size)
    w3, b3 = linear(ks[4], ks[5], hidden_size, output_size)
    return {"w1": w1, "b1": b1, "w2": w2, "b2": b2, "w3": w3, "b3": b3}


if __name__ == "__main__":
    key = jax.random.PRNGKey(0)
    k_x, k_p = jax.random.split(key)

    batch, input_size, hidden_size, output_size = 8, 32, 64, 16

    x = jax.random.normal(k_x, (batch, input_size), dtype=jnp.float32)
    params = init_params(k_p, input_size, hidden_size, output_size)

    out = jax.block_until_ready(dnn_forward(x, params))

    # Pure-JAX f32 reference (eval-mode dropout = identity).
    def ref(x, p):
        h1 = jnp.maximum(x @ p["w1"] + p["b1"], 0.0)
        h2 = jnp.maximum(h1 @ p["w2"] + p["b2"], 0.0)
        return jax.nn.softmax(h2 @ p["w3"] + p["b3"], axis=1)

    expected = ref(x, params)

    assert out.shape == (batch, output_size)
    # Exact softmax division, but bf16 writeback -> row sums 1 within ~1e-2.
    assert jnp.allclose(jnp.sum(out, axis=1), jnp.ones(batch), atol=1e-2)
    # bf16 matmul operands / bf16 output -> loose elementwise tolerance.
    assert jnp.allclose(out, expected, atol=3e-2)

    print("KERNEL_OK")
</pallas_src>

<mosaic_0001>
module attributes {stable_mosaic.version = 11 : i64} {
  func.func @dnn_kernel(%arg0: i32, %arg1: memref<16x32xbf16, #tpu.memory_space<vmem>>, %arg2: memref<32x128xbf16, #tpu.memory_space<vmem>>, %arg3: memref<1x128xf32, #tpu.memory_space<vmem>>, %arg4: memref<128x128xbf16, #tpu.memory_space<vmem>>, %arg5: memref<1x128xf32, #tpu.memory_space<vmem>>, %arg6: memref<128x128xbf16, #tpu.memory_space<vmem>>, %arg7: memref<1x128xf32, #tpu.memory_space<vmem>>, %arg8: memref<16x128xbf16, #tpu.memory_space<vmem>>) attributes {dimension_semantics = [#tpu.dimension_semantics<parallel>], iteration_bounds = array<i64: 1>, scalar_prefetch = 0 : i64, scratch_operands = 0 : i64, tpu.core_type = #tpu.core_type<tc>, window_params = [{transform_indices = @transform_0, window_bounds = array<i64: 16, 32>}, {pipeline_mode = #tpu.pipeline_mode<synchronous>, transform_indices = @transform_1, window_bounds = array<i64: 32, 128>}, {pipeline_mode = #tpu.pipeline_mode<synchronous>, transform_indices = @transform_2, window_bounds = array<i64: 1, 128>}, {pipeline_mode = #tpu.pipeline_mode<synchronous>, transform_indices = @transform_3, window_bounds = array<i64: 128, 128>}, {pipeline_mode = #tpu.pipeline_mode<synchronous>, transform_indices = @transform_4, window_bounds = array<i64: 1, 128>}, {pipeline_mode = #tpu.pipeline_mode<synchronous>, transform_indices = @transform_5, window_bounds = array<i64: 128, 128>}, {pipeline_mode = #tpu.pipeline_mode<synchronous>, transform_indices = @transform_6, window_bounds = array<i64: 1, 128>}, {transform_indices = @transform_7, window_bounds = array<i64: 16, 128>}]} {
    %c0 = arith.constant 0 : index
    %c0_0 = arith.constant 0 : index
    %0 = vector.load %arg1[%c0, %c0_0] : memref<16x32xbf16, #tpu.memory_space<vmem>>, vector<16x32xbf16>
    %c0_1 = arith.constant 0 : index
    %c0_2 = arith.constant 0 : index
    %1 = vector.load %arg2[%c0_1, %c0_2] : memref<32x128xbf16, #tpu.memory_space<vmem>>, vector<32x128xbf16>
    %cst = arith.constant dense<0.000000e+00> : vector<16x128xf32>
    %2 = tpu.matmul %0, %1, %cst {dimension_numbers = #tpu.dot_dimension_numbers<[1], [0], [0], [1], [0, 0, 1, 1], [], []>} : vector<16x32xbf16>, vector<32x128xbf16>, vector<16x128xf32> -> vector<16x128xf32>
    %c0_3 = arith.constant 0 : index
    %c0_4 = arith.constant 0 : index
    %3 = vector.load %arg3[%c0_3, %c0_4] : memref<1x128xf32, #tpu.memory_space<vmem>>, vector<1x128xf32>
    %4 = vector.broadcast %3 : vector<1x128xf32> to vector<16x128xf32>
    %5 = arith.addf %2, %4 : vector<16x128xf32>
    %cst_5 = arith.constant 0.000000e+00 : f32
    %6 = vector.broadcast %cst_5 : f32 to vector<16x128xf32>
    %7 = arith.maximumf %5, %6 : vector<16x128xf32>
    %8 = arith.truncf %7 : vector<16x128xf32> to vector<16x128xbf16>
    %c0_6 = arith.constant 0 : index
    %c0_7 = arith.constant 0 : index
    %9 = vector.load %arg4[%c0_6, %c0_7] : memref<128x128xbf16, #tpu.memory_space<vmem>>, vector<128x128xbf16>
    %cst_8 = arith.constant dense<0.000000e+00> : vector<16x128xf32>
    %10 = tpu.matmul %8, %9, %cst_8 {dimension_numbers = #tpu.dot_dimension_numbers<[1], [0], [0], [1], [0, 0, 1, 1], [], []>} : vector<16x128xbf16>, vector<128x128xbf16>, vector<16x128xf32> -> vector<16x128xf32>
    %c0_9 = arith.constant 0 : index
    %c0_10 = arith.constant 0 : index
    %11 = vector.load %arg5[%c0_9, %c0_10] : memref<1x128xf32, #tpu.memory_space<vmem>>, vector<1x128xf32>
    %12 = vector.broadcast %11 : vector<1x128xf32> to vector<16x128xf32>
    %13 = arith.addf %10, %12 : vector<16x128xf32>
    %cst_11 = arith.constant 0.000000e+00 : f32
    %14 = vector.broadcast %cst_11 : f32 to vector<16x128xf32>
    %15 = arith.maximumf %13, %14 : vector<16x128xf32>
    %16 = arith.truncf %15 : vector<16x128xf32> to vector<16x128xbf16>
    %c0_12 = arith.constant 0 : index
    %c0_13 = arith.constant 0 : index
    %17 = vector.load %arg6[%c0_12, %c0_13] : memref<128x128xbf16, #tpu.memory_space<vmem>>, vector<128x128xbf16>
    %cst_14 = arith.constant dense<0.000000e+00> : vector<16x128xf32>
    %18 = tpu.matmul %16, %17, %cst_14 {dimension_numbers = #tpu.dot_dimension_numbers<[1], [0], [0], [1], [0, 0, 1, 1], [], []>} : vector<16x128xbf16>, vector<128x128xbf16>, vector<16x128xf32> -> vector<16x128xf32>
    %c0_15 = arith.constant 0 : index
    %c0_16 = arith.constant 0 : index
    %19 = vector.load %arg7[%c0_15, %c0_16] : memref<1x128xf32, #tpu.memory_space<vmem>>, vector<1x128xf32>
    %20 = vector.broadcast %19 : vector<1x128xf32> to vector<16x128xf32>
    %21 = arith.addf %18, %20 : vector<16x128xf32>
    %cst_17 = arith.constant dense<0xFF800000> : vector<16xf32>
    %22 = vector.multi_reduction <maximumf>, %21, %cst_17 [1] : vector<16x128xf32> to vector<16xf32>
    %23 = vector.shape_cast %22 : vector<16xf32> to vector<16x1xf32>
    %24 = vector.broadcast %23 : vector<16x1xf32> to vector<16x128xf32>
    %25 = arith.subf %21, %24 : vector<16x128xf32>
    %26 = math.exp %25 : vector<16x128xf32>
    %cst_18 = arith.constant dense<0.000000e+00> : vector<16xf32>
    %27 = vector.multi_reduction <add>, %26, %cst_18 [1] : vector<16x128xf32> to vector<16xf32>
    %28 = vector.shape_cast %27 : vector<16xf32> to vector<16x1xf32>
    %29 = vector.broadcast %28 : vector<16x1xf32> to vector<16x128xf32>
    %30 = arith.divf %26, %29 : vector<16x128xf32>
    %31 = arith.truncf %30 : vector<16x128xf32> to vector<16x128xbf16>
    %c0_19 = arith.constant 0 : index
    %c0_20 = arith.constant 0 : index
    %32 = vector.load %arg8[%c0_19, %c0_20] : memref<16x128xbf16, #tpu.memory_space<vmem>>, vector<16x128xbf16>
    tpu.vector_store %arg8[%c0_19, %c0_20], %31 {strides = array<i32>} : memref<16x128xbf16, #tpu.memory_space<vmem>>, vector<16x128xbf16>,
    return
  }
  func.func @transform_0(%arg0: i32) -> (i32, i32) {
    %c0_i32 = arith.constant 0 : i32
    %c0_i32_0 = arith.constant 0 : i32
    return %arg0, %c0_i32 : i32, i32
  }
  func.func @transform_1(%arg0: i32) -> (i32, i32) {
    %c0_i32 = arith.constant 0 : i32
    %c0_i32_0 = arith.constant 0 : i32
    %c0_i32_1 = arith.constant 0 : i32
    return %c0_i32, %c0_i32_0 : i32, i32
  }
  func.func @transform_2(%arg0: i32) -> (i32, i32) {
    %c0_i32 = arith.constant 0 : i32
    %c0_i32_0 = arith.constant 0 : i32
    %c0_i32_1 = arith.constant 0 : i32
    return %c0_i32, %c0_i32_0 : i32, i32
  }
  func.func @transform_3(%arg0: i32) -> (i32, i32) {
    %c0_i32 = arith.constant 0 : i32
    %c0_i32_0 = arith.constant 0 : i32
    %c0_i32_1 = arith.constant 0 : i32
    return %c0_i32, %c0_i32_0 : i32, i32
  }
  func.func @transform_4(%arg0: i32) -> (i32, i32) {
    %c0_i32 = arith.constant 0 : i32
    %c0_i32_0 = arith.constant 0 : i32
    %c0_i32_1 = arith.constant 0 : i32
    return %c0_i32, %c0_i32_0 : i32, i32
  }
  func.func @transform_5(%arg0: i32) -> (i32, i32) {
    %c0_i32 = arith.constant 0 : i32
    %c0_i32_0 = arith.constant 0 : i32
    %c0_i32_1 = arith.constant 0 : i32
    return %c0_i32, %c0_i32_0 : i32, i32
  }
  func.func @transform_6(%arg0: i32) -> (i32, i32) {
    %c0_i32 = arith.constant 0 : i32
    %c0_i32_0 = arith.constant 0 : i32
    %c0_i32_1 = arith.constant 0 : i32
    return %c0_i32, %c0_i32_0 : i32, i32
  }
  func.func @transform_7(%arg0: i32) -> (i32, i32) {
    %c0_i32 = arith.constant 0 : i32
    %c0_i32_0 = arith.constant 0 : i32
    return %arg0, %c0_i32 : i32, i32
  }
}

</mosaic_0001>

<bundles_post_ra>
// kernel: tpu_custom_call.1
= control target key start
LH: loop header
LB: loop body
LE: loop exit
PB: predicated region body
PF: predicated region fallthrough
CT: control target
= control target key end

     0   :  { %12 = vsyncpa [#allocation3], 0  ;;  %s861_s0 = inlined_call_operand.hbm [shape: bf16[16,32], index: 0, kind: input, shape index: {}]   ;;  %s862_s1 = inlined_call_operand.hbm [shape: bf16[32,128], index: 1, kind: input, shape index: {}]   ;;  %s863_s2 = inlined_call_operand.vmem [shape: f32[1,128], index: 2, kind: input, shape index: {}]   ;;  %s864_s3 = inlined_call_operand.hbm [shape: bf16[128,128], index: 3, kind: input, shape index: {}]   ;;  %s865_s4 = inlined_call_operand.vmem [shape: f32[1,128], index: 4, kind: input, shape index: {}]   ;;  %s866_s5 = inlined_call_operand.hbm [shape: bf16[128,128], index: 5, kind: input, shape index: {}]   ;;  %s867_s6 = inlined_call_operand.vmem [shape: f32[1,128], index: 6, kind: input, shape index: {}]   ;;  %s868_s7 = inlined_call_operand.hbm [shape: bf16[16,128], index: 7, kind: output, shape index: {}]  }
   0x1   :  { %13 = vsyncpa [#allocation6], 0 }
   0x2   :  { %14 = vsyncpa [#allocation9], 0 }
   0x3   :  { %15 = vsyncpa [#allocation4], 0  ;;  %s690_s24 = smov [#allocation5]   ;;  %s691_s26 = smov [#allocation2]  }
   0x4   :  { %s33_s25 = sshll.u32 %s690_s24, 4  ;;  %s21_s27 = sshll.u32 %s691_s26, 4  ;;  %s34_s25 = int_to_ptr.vmem [resolvable:$true] %s33_s25  ;;  %s739_s27 = int_to_ptr.vmem [resolvable:$true] %s21_s27 }
   0x5   :  { %s572_s30 = scalar_lea.hbm %s862_s1, 256 }
   0x6   :  { %p573_p0 = scmp.ne.s32.totalorder %s862_s1, %s572_s30  ;;  %p576_p1 = scmp.lt.u32.totalorder %s572_s30, %s862_s1 }
   0x8   :  { %p578_p2 = pnand %p576_p1, %p573_p0 }
   0xa   :  { %581 = shalt.err (!%p578_p2)
}
   0xb   :  { %s582_s12 = scalar_lea.vmem %s34_s25, 256  ;;  %p587_p4 = scmp.lt.s32.totalorder %s34_s25, %s34_s25 }
   0xc   :  { %p583_p3 = scmp.ne.s32.totalorder %s34_s25, %s582_s12  ;;  %p588_p5 = scmp.lt.s32.totalorder %s582_s12, %s582_s12 }
   0xe   :  { %p589_p6 = por %p588_p5, %p587_p4 }
  0x10   :  { %p590_p7 = pnand %p589_p6, %p583_p3 }
  0x12   :  { %593 = shalt.err (!%p590_p7)
}
  0x13   :  { %s692_s13 = smov 64   ;;  %s693_s14 = smov 4  }
  0x14   :  { %39 = dma.hbm_to_vmem [thread:$0]  %s862_s1, 256, %s34_s25, [#allocation6], %s692_s13, %s692_s13, %s693_s14  }
  0x15   :  { %s594_s19 = scalar_lea.hbm %s861_s0, 128 }
  0x16   :  { %p595_p8 = scmp.ne.s32.totalorder %s861_s0, %s594_s19  ;;  %p598_p9 = scmp.lt.u32.totalorder %s594_s19, %s861_s0 }
  0x18   :  { %p600_p10 = pnand %p598_p9, %p595_p8 }
  0x1a   :  { %603 = shalt.err (!%p600_p10)
}
  0x1b   :  { %s604_s24 = scalar_lea.vmem %s739_s27, 128  ;;  %p609_p12 = scmp.lt.s32.totalorder %s739_s27, %s739_s27 }
  0x1c   :  { %p605_p11 = scmp.ne.s32.totalorder %s739_s27, %s604_s24  ;;  %p610_p13 = scmp.lt.s32.totalorder %s604_s24, %s604_s24 }
  0x1e   :  { %p611_p0 = por %p610_p13, %p609_p12 }
  0x20   :  { %p612_p1 = pnand %p611_p0, %p605_p11 }
  0x22   :  { %615 = shalt.err (!%p612_p1)
}
  0x23   :  { %27 = dma.hbm_to_vmem [thread:$0]  %s861_s0, 128, %s739_s27, [#allocation3], %s692_s13, %s692_s13, %s693_s14  }
  0x24   :  { %s694_s26 = smov [#allocation7]   ;;  %s695_s29 = smov [#allocation8]  }
  0x25   :  { %s47_s28 = sshll.u32 %s694_s26, 4  ;;  %s61_s30 = sshll.u32 %s695_s29, 4  ;;  %s48_s28 = int_to_ptr.vmem [resolvable:$true] %s47_s28  ;;  %s776_s30 = int_to_ptr.vmem [resolvable:$true] %s61_s30 }
  0x26   :  { %s616_s10 = scalar_lea.hbm %s864_s3, 1024 }
  0x27   :  { %p617_p2 = scmp.ne.s32.totalorder %s864_s3, %s616_s10  ;;  %p620_p3 = scmp.lt.u32.totalorder %s616_s10, %s864_s3 }
  0x29   :  { %p622_p4 = pnand %p620_p3, %p617_p2 }
  0x2b   :  { %625 = shalt.err (!%p622_p4)
}
  0x2c   :  { %s626_s0 = scalar_lea.vmem %s48_s28, 1024  ;;  %p631_p6 = scmp.lt.s32.totalorder %s48_s28, %s48_s28 }
  0x2d   :  { %p627_p5 = scmp.ne.s32.totalorder %s48_s28, %s626_s0  ;;  %p632_p7 = scmp.lt.s32.totalorder %s626_s0, %s626_s0 }
  0x2f   :  { %p633_p8 = por %p632_p7, %p631_p6 }
  0x31   :  { %p634_p9 = pnand %p633_p8, %p627_p5 }
  0x33   :  { %637 = shalt.err (!%p634_p9)
}
  0x34   :  { %53 = dma.hbm_to_vmem [thread:$0]  %s864_s3, 1024, %s48_s28, [#allocation6], %s692_s13, %s692_s13, %s693_s14  }
  0x35   :  { %s638_s20 = scalar_lea.hbm %s866_s5, 1024 }
  0x36   :  { %p639_p10 = scmp.ne.s32.totalorder %s866_s5, %s638_s20  ;;  %p642_p11 = scmp.lt.u32.totalorder %s638_s20, %s866_s5 }
  0x38   :  { %p644_p12 = pnand %p642_p11, %p639_p10 }
  0x3a   :  { %647 = shalt.err (!%p644_p12)
}
  0x3b   :  { %s648_s1 = scalar_lea.vmem %s776_s30, 1024  ;;  %p653_p0 = scmp.lt.s32.totalorder %s776_s30, %s776_s30 }
  0x3c   :  { %p649_p13 = scmp.ne.s32.totalorder %s776_s30, %s648_s1  ;;  %p654_p1 = scmp.lt.s32.totalorder %s648_s1, %s648_s1 }
  0x3e   :  { %p655_p2 = por %p654_p1, %p653_p0 }
  0x40   :  { %p656_p3 = pnand %p655_p2, %p649_p13 }
  0x42   :  { %659 = shalt.err (!%p656_p3)
}
  0x43   :  { %67 = dma.hbm_to_vmem [thread:$0]  %s866_s5, 1024, %s776_s30, [#allocation9], %s692_s13, %s692_s13, %s693_s14  }
  0x44   :  { %682 = dma.done.wait [#allocation3], 128  }
  0x45   :  { %683 = vsyncadd [#allocation3], 4294967168 }
  0x46   :  { %684 = dma.done.wait [#allocation6], 1280  }
  0x47   :  { %685 = vsyncadd [#allocation6], 4294966016 }
  0x48   :  { %686 = dma.done.wait [#allocation9], 1024  }
  0x49   :  { %687 = vsyncadd [#allocation9], 4294966272  ;;  %v696_v0 = vmov 0.0   ;;  %vm697_vm0 = vmmov 0   ;;  %v545_v1 = vld [vmem:[#allocation5] sm:$0xff]   ;;  %v546_v2 = vld [vmem:[#allocation5 + $0x8] sm:$0xff]  }
  0x4a   :  { %488 = vmatprep.subr.bf16.mxu0 %v696_v0  ;;  %492 = vmatprep.mubr.msk.bf16.mxu0 %vm697_vm0, %v696_v0  ;;  %v548_v3 = vld [vmem:[#allocation7] sm:$0xff]   ;;  %v547_v4 = vld [vmem:[#allocation2] sm:$0xff]   ;;  %vm113_vm1 = vcmask 261120   ;;  %v550_v6 = vld [vmem:[#allocation7 + $0x10] sm:$0xff]  }
  0x4b   :  { %496 = vmatprep.subr.bf16.mxu1 %v696_v0  ;;  %512 = vmatprep.mubr.msk.bf16.mxu1 %vm697_vm0, %v696_v0  ;;  %v549_v5 = vld [vmem:[#allocation7 + $0x8] sm:$0xff]   ;;  %v551_v7 = vld [vmem:[#allocation7 + $0x18] sm:$0xff]   ;;  %v552_v8 = vld [vmem:[#allocation7 + $0x20] sm:$0xff]  }
  0x4c   :  { %489 = vmatpush3.bf16.msra.mxu0 %v545_v1  ;;  %497 = vmatpush3.bf16.msra.mxu1 %v548_v3  ;;  %v553_v9 = vld [vmem:[#allocation7 + $0x28] sm:$0xff]   ;;  %v554_v10 = vld [vmem:[#allocation7 + $0x30] sm:$0xff]   ;;  %v555_v11 = vld [vmem:[#allocation7 + $0x38] sm:$0xff]  }
  0x4d   :  { %490 = vmatprep.subr.bf16.mxu0 %v696_v0  ;;  %498 = vmatprep.subr.bf16.mxu1 %v696_v0  ;;  %v556_v12 = vld [vmem:[#allocation8] sm:$0xff]   ;;  %v557_v13 = vld [vmem:[#allocation8 + $0x8] sm:$0xff]   ;;  %v558_v14 = vld [vmem:[#allocation8 + $0x10] sm:$0xff]  }
  0x4e   :  { %v559_v15 = vld [vmem:[#allocation8 + $0x18] sm:$0xff]   ;;  %v560_v16 = vld [vmem:[#allocation8 + $0x20] sm:$0xff]   ;;  %v561_v17 = vld [vmem:[#allocation8 + $0x28] sm:$0xff]  }
  0x4f   :  { %v435_v18 = vld [vmem:[%s863_s2] ss:$0 sm:$0xff]  ;;  %v562_v28 = vld [vmem:[#allocation8 + $0x30] sm:$0xff]   ;;  %v563_v29 = vld [vmem:[#allocation8 + $0x38] sm:$0xff]  }
  0x50   :  { %491 = vmatpush3.bf16.msra.mxu0 %v546_v2  ;;  %499 = vmatpush3.bf16.msra.mxu1 %v549_v5  ;;  %v440_v30 = vld [vmem:[%s865_s4] ss:$0 sm:$0xff]  ;;  %s698_s4 = smov [#allocation10]  }
  0x51   :  { %516 = vmatprep.subr.bf16.mxu0 %v696_v0  ;;  %500 = vmatprep.subr.bf16.mxu1 %v696_v0  ;;  %v449_v40 = vld [vmem:[%s867_s6] ss:$0 sm:$0xff]  ;;  %s421_s6 = sshll.u32 %s698_s4, 4  ;;  %s422_s6 = int_to_ptr.vmem [resolvable:$true] %s421_s6 }
  0x52   :  { %s660_s8 = scalar_lea.vmem %s422_s6, 128  ;;  %p665_p5 = scmp.lt.s32.totalorder %s422_s6, %s422_s6 }
  0x53   :  { %493 = vmatmul.mubr.msk.bf16.vlgmr.msra.gmra.mrb[0].mxu0 %vm113_vm1, %v547_v4  ;;  %p661_p4 = scmp.ne.s32.totalorder %s422_s6, %s660_s8  ;;  %p666_p6 = scmp.lt.s32.totalorder %s660_s8, %s660_s8 }
  0x54   :  { %532 = vmatprep.mubr.msk.bf16.mxu0 %vm697_vm0, %v696_v0  ;;  %501 = vmatpush3.bf16.msra.mxu1 %v550_v6 }
  0x55   :  { %502 = vmatprep.subr.bf16.mxu1 %v696_v0  ;;  %517 = vmatpush3.bf16.msra.mxu0 %v556_v12  ;;  %p667_p7 = por %p666_p6, %p665_p5 }
  0x56   :  { %518 = vmatprep.subr.bf16.mxu0 %v696_v0 }
  0x57   :  { %p668_p8 = pnand %p667_p7, %p661_p4 }
  0x58   :  { %503 = vmatpush3.bf16.msra.mxu1 %v551_v7 }
  0x59   :  { %504 = vmatprep.subr.bf16.mxu1 %v696_v0  ;;  %519 = vmatpush3.bf16.msra.mxu0 %v557_v13 }
  0x5a   :  { %520 = vmatprep.subr.bf16.mxu0 %v696_v0 }
  0x5c   :  { %505 = vmatpush3.bf16.msra.mxu1 %v552_v8 }
  0x5d   :  { %506 = vmatprep.subr.bf16.mxu1 %v696_v0  ;;  %521 = vmatpush3.bf16.msra.mxu0 %v558_v14 }
  0x5e   :  { %522 = vmatprep.subr.bf16.mxu0 %v696_v0 }
  0x60   :  { %507 = vmatpush3.bf16.msra.mxu1 %v553_v9 }
  0x61   :  { %508 = vmatprep.subr.bf16.mxu1 %v696_v0  ;;  %523 = vmatpush3.bf16.msra.mxu0 %v559_v15 }
  0x62   :  { %524 = vmatprep.subr.bf16.mxu0 %v696_v0 }
  0x64   :  { %509 = vmatpush3.bf16.msra.mxu1 %v554_v10 }
  0x65   :  { %510 = vmatprep.subr.bf16.mxu1 %v696_v0  ;;  %525 = vmatpush3.bf16.msra.mxu0 %v560_v16 }
  0x66   :  { %526 = vmatprep.subr.bf16.mxu0 %v696_v0 }
  0x68   :  { %511 = vmatpush3.bf16.msra.mxu1 %v555_v11 }
  0x69   :  { %527 = vmatpush3.bf16.msra.mxu0 %v561_v17 }
  0x6a   :  { %528 = vmatprep.subr.bf16.mxu0 %v696_v0 }
  0x6d   :  { %529 = vmatpush3.bf16.msra.mxu0 %v562_v28 }
  0x6e   :  { %530 = vmatprep.subr.bf16.mxu0 %v696_v0 }
  0x71   :  { %531 = vmatpush3.bf16.msra.mxu0 %v563_v29 }
 0x126   :  { %v151_v19 = vpop.f32.mrb[0].mxu0 }
 0x127   :  { %v152_v20 = vadd.f32 %v435_v18, %v151_v19  ;;  %v494_v21 = vpop.f32.mrb[1].mxu0 }
 0x128   :  { %v154_v22 = vpop.f32.mrb[2].mxu0 }
 0x129   :  { %v155_v23 = vadd.f32 %v435_v18, %v154_v22  ;;  %v495_v24 = vpop.f32.mrb[3].mxu0  ;;  %v158_v25 = vmax.f32 %v152_v20, 0.0 }
 0x12b   :  { %v159_v26 = vmax.f32 %v155_v23, 0.0 }
 0x12d   :  { %v160_v27 = vpack.c.bf16 %v159_v26, %v158_v25 }
 0x12f   :  { %513 = vmatmul.mubr.bf16.vlgmr.msra.gmra.mrb[0].mxu1 %v160_v27 }
 0x202   :  { %v266_v31 = vpop.f32.mrb[0].mxu1 }
 0x203   :  { %v267_v32 = vadd.f32 %v440_v30, %v266_v31  ;;  %v514_v33 = vpop.f32.mrb[1].mxu1 }
 0x204   :  { %v269_v34 = vpop.f32.mrb[2].mxu1 }
 0x205   :  { %v270_v35 = vadd.f32 %v440_v30, %v269_v34  ;;  %v515_v36 = vpop.f32.mrb[3].mxu1  ;;  %v273_v37 = vmax.f32 %v267_v32, 0.0 }
 0x207   :  { %v274_v38 = vmax.f32 %v270_v35, 0.0 }
 0x209   :  { %v275_v39 = vpack.c.bf16 %v274_v38, %v273_v37 }
 0x20b   :  { %533 = vmatmul.mubr.bf16.vlgmr.msra.gmra.mrb[4].mxu0 %v275_v39 }
 0x2de   :  { %v381_v41 = vpop.f32.mrb[4].mxu0 }
 0x2df   :  { %v382_v42 = vadd.f32 %v449_v40, %v381_v41  ;;  %v534_v43 = vpop.f32.mrb[5].mxu0 }
 0x2e0   :  { %v384_v44 = vpop.f32.mrb[6].mxu0 }
 0x2e1   :  { %388 = vmax.xlane.f32.xlu0 %v382_v42  ;;  %v535_v45 = vpop.f32.mrb[7].mxu0  ;;  %v385_v46 = vadd.f32 %v449_v40, %v384_v44 }
 0x2e5   :  { %390 = vmax.xlane.f32.xlu0 %v385_v46 }
 0x36e   :  { %v389_v47 = vpop.xlane.xlu0 %388 }
 0x36f   :  { %v392_v48 = vsub.f32 %v382_v42, %v389_v47 }
 0x371   :  { %v394_v49 = vmul.f32 1.442695, %v392_v48 }
 0x372   :  { %v391_v50 = vpop.xlane.xlu0 %390 }
 0x373   :  { %564 = vpow2.f32 %v394_v49  ;;  %v393_v51 = vsub.f32 %v385_v46, %v391_v50 }
 0x375   :  { %v396_v52 = vmul.f32 1.442695, %v393_v51 }
 0x377   :  { %566 = vpow2.f32 %v396_v52 }
 0x37d   :  { %v565_v53 = vpop.eup %564 }
 0x37e   :  { %398 = vadd.xlane.f32.xlu1 %v565_v53 }
 0x381   :  { %v567_v54 = vpop.eup %566 }
 0x382   :  { %400 = vadd.xlane.f32.xlu1 %v567_v54 }
 0x40b   :  { %v399_v55 = vpop.xlane.xlu1 %398 }
 0x40c   :  { %568 = vrcp.f32 %v399_v55 }
 0x40f   :  { %v401_v56 = vpop.xlane.xlu1 %400 }
 0x410   :  { %570 = vrcp.f32 %v401_v56 }
 0x416   :  { %v569_v57 = vpop.eup %568 }
 0x417   :  { %v403_v59 = vmul.f32 %v569_v57, %v565_v53 }
 0x41a   :  { %v571_v58 = vpop.eup %570 }
 0x41b   :  { %v405_v60 = vmul.f32 %v571_v58, %v567_v54 }
 0x41d   :  { %v465_v61 = vpack.c.bf16 %v405_v60, %v403_v59 }
 0x41f   :  { %466 = vst [vmem:[#allocation10] sm:$0xff] %v465_v61  }
 0x420   :  { %671 = shalt.err (!%p668_p8)
}
 0x421   :  { %s672_s11 = scalar_lea.hbm %s868_s7, 128 }
 0x422   :  { %p673_p9 = scmp.ne.s32.totalorder %s868_s7, %s672_s11  ;;  %p676_p10 = scmp.lt.u32.totalorder %s672_s11, %s868_s7 }
 0x424   :  { %p678_p11 = pnand %p676_p10, %p673_p9 }
 0x426   :  { %681 = shalt.err (!%p678_p11)
}
 0x427   :  { %427 = dma.vmem_to_hbm [thread:$0]  %s422_s6, 128, %s868_s7, [#allocation4], %s692_s13, %s692_s13, %s693_s14  }
 0x428   :  { %688 = dma.done.wait [#allocation4], 128  }
 0x429   :  { %689 = vsyncadd [#allocation4], 4294967168 }
 0x42a   :  { %431 = vsyncpa [#allocation3], 1 }
 0x42b   :  { %432 = vsyncpa [#allocation6], 1 }
 0x42c   :  { %433 = vsyncpa [#allocation9], 1 }
 0x42d   :  { %434 = vsyncpa [#allocation4], 1 }

</bundles_post_ra>
